<compile_context>
chip_gen: v6e
topology: v6e:2x2x1
jax: 0.10.0
libtpu: 0.0.40
codegen_flags: <defaults>
</compile_context>

<pallas_src>
import functools

import jax
import jax.numpy as jnp
from jax.experimental import pallas as pl
from jax.experimental.pallas import tpu as pltpu

EPS = 1e-6  # annotated-transformer style LayerNorm epsilon


def _vmem_capacity_bytes():
    try:
        return int(pltpu.get_tpu_info().vmem_capacity_bytes)
    except Exception:
        return 64 << 20  # conservative fallback (v7x physical VMEM)


def _round_up(n, m):
    return (n + m - 1) // m * m


def _layernorm_residual(y, x_f32, params_f32, out_dtype):
    """y: (tm, H) f32 pre-bias sublayer output; x_f32: (tm, H) residual; params: (3, H) f32."""
    b = params_f32[0:1, :]
    gamma = params_f32[1:2, :]
    beta = params_f32[2:3, :]
    y = y + b
    # One-pass statistics: mean = E[y], var = E[y^2] - mean^2 (single (tm,H) VALU pass).
    inv_h = 1.0 / y.shape[-1]
    mean = jnp.sum(y, axis=-1, keepdims=True) * inv_h
    mean_sq = jnp.sum(y * y, axis=-1, keepdims=True) * inv_h
    var = jnp.maximum(mean_sq - mean * mean, 0.0)  # clamp: one-pass var can cancel negative
    normed = (y - mean) * jax.lax.rsqrt(var + EPS)
    normed = normed * gamma + beta
    # dropout in eval mode == identity; residual add in f32, cast back.
    # TODO(synk): training-mode dropout mask not implemented.
    return (x_f32 + normed).astype(out_dtype)


def _resident_kernel(x_ref, w_ref, p_ref, o_ref):
    # x_ref: (TM, H) tile of the flattened (B*S, H) input, native dtype.
    x = x_ref[...]
    # MXU matmul with native-dtype operands, f32 accumulation.
    y = jnp.dot(x, w_ref[...], preferred_element_type=jnp.float32)
    o_ref[...] = _layernorm_residual(
        y, x.astype(jnp.float32), p_ref[...].astype(jnp.float32), o_ref.dtype)


def _ktiled_kernel(xk_ref, xfull_ref, w_ref, p_ref, o_ref, acc_ref):
    # Grid = (row_tiles, k_tiles); reduction axis (k) last, accumulator in VMEM scratch.
    k = pl.program_id(1)

    @pl.when(k == 0)
    def _():
        acc_ref[...] = jnp.zeros_like(acc_ref)

    acc_ref[...] += jnp.dot(xk_ref[...], w_ref[...], preferred_element_type=jnp.float32)

    @pl.when(k == pl.num_programs(1) - 1)
    def _():
        o_ref[...] = _layernorm_residual(
            acc_ref[...], xfull_ref[...].astype(jnp.float32),
            p_ref[...].astype(jnp.float32), o_ref.dtype)


@functools.partial(jax.jit, static_argnames=("tm", "force_k_tiling"))
def sublayer_connection(x, w, b, gamma, beta, *, tm=None, force_k_tiling=False):
    """x: (B, S, H); w: (H, H); b, gamma, beta: (H,). Returns (B, S, H)."""
    B, S, H = x.shape
    rows = B * S
    dtype = x.dtype
    isz = jnp.dtype(dtype).itemsize
    wsz = jnp.dtype(w.dtype).itemsize

    # Row alignment follows dtype sublane packing: 8 rows f32, 16 bf16, 32 for 8-bit.
    row_align = max(8, 32 // isz)

    vmem_cap = _vmem_capacity_bytes()
    budget = int(0.8 * vmem_cap)  # generation-aware: ~51 MiB on v7x, ~102 MiB on v5e/v6e

    # Target row tile: ~4 MiB of input per tile; cap so grid has >= ~4 steps.
    if tm is None:
        tm = max(1024, (4 << 20) // max(1, H * isz))
    tm_cap = max(row_align, _round_up(pl.cdiv(rows, 4), row_align))
    tm_eff = max(row_align, min(_round_up(tm, row_align), tm_cap))

    params = jnp.stack([b, gamma, beta])  # (3, H): one small resident operand
    params_bytes = 3 * H * jnp.dtype(params.dtype).itemsize

    x2 = x.reshape(rows, H)  # free reshape; NO jnp.pad — partial last block is masked

    def _resident_tile_bytes(t):
        # double-buffered x tile + out tile, plus ~3 f32 intermediates (y, y*y, normed)
        return 4 * t * H * isz + 3 * t * H * 4

    w_resident_bytes = H * H * wsz  # single-buffered via pl.Buffered(1)
    use_k_tiling = force_k_tiling or (
        w_resident_bytes + params_bytes + _resident_tile_bytes(row_align) > budget)

    if not use_k_tiling:
        while (tm_eff > row_align and
               w_resident_bytes + params_bytes + _resident_tile_bytes(tm_eff) > budget):
            tm_eff = max(row_align, _round_up(tm_eff // 2, row_align))
        ws = w_resident_bytes + params_bytes + _resident_tile_bytes(tm_eff)
        vmem_limit = min(vmem_cap, max(ws + (8 << 20), 32 << 20))

        out = pl.pallas_call(
            _resident_kernel,
            out_shape=jax.ShapeDtypeStruct((rows, H), dtype),
            grid_spec=pltpu.PrefetchScalarGridSpec(
                num_scalar_prefetch=0,
                grid=(pl.cdiv(rows, tm_eff),),
                in_specs=[
                    pl.BlockSpec((tm_eff, H), lambda i: (i, 0)),                      # x tile
                    pl.BlockSpec((H, H), lambda i: (0, 0),
                                 pipeline_mode=pl.Buffered(1)),                       # W resident
                    pl.BlockSpec((3, H), lambda i: (0, 0),
                                 pipeline_mode=pl.Buffered(1)),                       # b/gamma/beta
                ],
                out_specs=pl.BlockSpec((tm_eff, H), lambda i: (i, 0)),
            ),
            compiler_params=pltpu.CompilerParams(
                dimension_semantics=("parallel",),  # row axis shards across TCs on v7x
                vmem_limit_bytes=int(vmem_limit),
            ),
        )(x2, w, params)
    else:
        # K-tiled contraction: keeps both W tiles and row tiles large when a resident
        # (H, H) weight no longer fits VMEM (e.g. large H under v7x's 64 MiB).
        tk = H
        for cand in (512, 384, 256, 128):
            if H % cand == 0:
                tk = cand
                break

        def _ktile_bytes(t):
            return (2 * t * tk * isz      # x K-tile
                    + 2 * t * H * isz     # full-row x (residual)
                    + 2 * t * H * isz     # out tile
                    + t * H * 4           # f32 accumulator scratch
                    + 2 * t * H * 4)      # f32 intermediates

        w_tile_bytes = 2 * tk * H * wsz
        while (tm_eff > row_align and
               w_tile_bytes + params_bytes + _ktile_bytes(tm_eff) > budget):
            tm_eff = max(row_align, _round_up(tm_eff // 2, row_align))
        ws = w_tile_bytes + params_bytes + _ktile_bytes(tm_eff)
        vmem_limit = min(vmem_cap, max(ws + (8 << 20), 32 << 20))

        out = pl.pallas_call(
            _ktiled_kernel,
            out_shape=jax.ShapeDtypeStruct((rows, H), dtype),
            grid_spec=pltpu.PrefetchScalarGridSpec(
                num_scalar_prefetch=0,
                grid=(pl.cdiv(rows, tm_eff), H // tk),
                in_specs=[
                    pl.BlockSpec((tm_eff, tk), lambda i, k: (i, k)),   # x K-slice (matmul)
                    pl.BlockSpec((tm_eff, H), lambda i, k: (i, 0)),    # x full row (residual)
                    pl.BlockSpec((tk, H), lambda i, k: (k, 0)),        # W K-slice
                    pl.BlockSpec((3, H), lambda i, k: (0, 0),
                                 pipeline_mode=pl.Buffered(1)),        # b/gamma/beta
                ],
                out_specs=pl.BlockSpec((tm_eff, H), lambda i, k: (i, 0)),
                scratch_shapes=[pltpu.VMEM((tm_eff, H), jnp.float32)],
            ),
            compiler_params=pltpu.CompilerParams(
                dimension_semantics=("parallel", "arbitrary"),
                vmem_limit_bytes=int(vmem_limit),
            ),
        )(x2, x2, w, params)

    return out.reshape(B, S, H)


def _reference(x, w, b, gamma, beta):
    xf = x.astype(jnp.float32)
    y = jnp.einsum("bsh,hk->bsk", xf, w.astype(jnp.float32)) + b.astype(jnp.float32)
    mean = jnp.mean(y, axis=-1, keepdims=True)
    var = jnp.mean((y - mean) ** 2, axis=-1, keepdims=True)
    normed = (y - mean) * jax.lax.rsqrt(var + EPS)
    normed = normed * gamma.astype(jnp.float32) + beta.astype(jnp.float32)
    return (xf + normed).astype(x.dtype)


if __name__ == "__main__":
    key = jax.random.PRNGKey(0)
    kx, kw, kx2, kw2, kx3 = jax.random.split(key, 5)

    # Parameters (synthetic, deterministic; shapes match the module):
    # sublayer = Linear(H, H); LayerNorm(size=H) -> gamma=ones, beta=zeros.
    H = 128  # lane-dense hidden size
    w = jax.random.normal(kw, (H, H), dtype=jnp.float32) * 0.02
    b = jnp.zeros((H,), dtype=jnp.float32)
    gamma = jnp.ones((H,), dtype=jnp.float32)
    beta = jnp.zeros((H,), dtype=jnp.float32)

    # --- f32 path ---
    B, S = 2, 8
    x = jax.random.normal(kx, (B, S, H), dtype=jnp.float32)
    out = jax.block_until_ready(sublayer_connection(x, w, b, gamma, beta))
    ref = _reference(x, w, b, gamma, beta)
    assert out.shape == (B, S, H)
    assert jnp.allclose(out, ref, atol=2e-2, rtol=2e-2), "f32 mismatch vs reference"

    # --- ragged row count: exercises the non-divisible grid (no host pad/slice) ---
    Br, Sr = 3, 5
    xr = jax.random.normal(kx2, (Br, Sr, H), dtype=jnp.float32)
    out_r = jax.block_until_ready(sublayer_connection(xr, w, b, gamma, beta))
    ref_r = _reference(xr, w, b, gamma, beta)
    assert out_r.shape == (Br, Sr, H)
    assert jnp.allclose(out_r, ref_r, atol=2e-2, rtol=2e-2), "ragged mismatch vs reference"

    # --- bf16 path (halved HBM traffic; native bf16 MXU operands, f32 accumulation) ---
    out_b = jax.block_until_ready(sublayer_connection(
        x.astype(jnp.bfloat16), w.astype(jnp.bfloat16), b.astype(jnp.bfloat16),
        gamma.astype(jnp.bfloat16), beta.astype(jnp.bfloat16)))
    ref_b = _reference(x.astype(jnp.bfloat16), w.astype(jnp.bfloat16), b.astype(jnp.bfloat16),
                       gamma.astype(jnp.bfloat16), beta.astype(jnp.bfloat16))
    assert out_b.shape == (B, S, H)
    assert jnp.allclose(out_b.astype(jnp.float32), ref_b.astype(jnp.float32),
                        atol=1.5e-1, rtol=1.5e-1), "bf16 mismatch vs reference"

    # --- forced K-tiled contraction path (large-H fallback), H=256 -> 2 K steps ---
    H2 = 256
    w2 = jax.random.normal(kw2, (H2, H2), dtype=jnp.float32) * 0.02
    b2 = jnp.zeros((H2,), jnp.float32)
    g2 = jnp.ones((H2,), jnp.float32)
    be2 = jnp.zeros((H2,), jnp.float32)
    x3 = jax.random.normal(kx3, (2, 8, H2), dtype=jnp.float32)
    out_k = jax.block_until_ready(
        sublayer_connection(x3, w2, b2, g2, be2, force_k_tiling=True))
    ref_k = _reference(x3, w2, b2, g2, be2)
    assert out_k.shape == (2, 8, H2)
    assert jnp.allclose(out_k, ref_k, atol=2e-2, rtol=2e-2), "k-tiled mismatch vs reference"

    print("KERNEL_OK")
</pallas_src>

<mosaic_0001>
module attributes {stable_mosaic.version = 11 : i64} {
  func.func @_resident_kernel(%arg0: i32, %arg1: memref<8x128xf32, #tpu.memory_space<vmem>>, %arg2: memref<128x128xf32, #tpu.memory_space<vmem>>, %arg3: memref<3x128xf32, #tpu.memory_space<vmem>>, %arg4: memref<8x128xf32, #tpu.memory_space<vmem>>) attributes {dimension_semantics = [#tpu.dimension_semantics<parallel>], iteration_bounds = array<i64: 2>, scalar_prefetch = 0 : i64, scratch_operands = 0 : i64, tpu.core_type = #tpu.core_type<tc>, window_params = [{transform_indices = @transform_0, window_bounds = array<i64: 8, 128>}, {pipeline_mode = #tpu.pipeline_mode<synchronous>, transform_indices = @transform_1, window_bounds = array<i64: 128, 128>}, {pipeline_mode = #tpu.pipeline_mode<synchronous>, transform_indices = @transform_2, window_bounds = array<i64: 3, 128>}, {transform_indices = @transform_3, window_bounds = array<i64: 8, 128>}]} {
    %c0 = arith.constant 0 : index
    %c0_0 = arith.constant 0 : index
    %0 = vector.load %arg1[%c0, %c0_0] : memref<8x128xf32, #tpu.memory_space<vmem>>, vector<8x128xf32>
    %c0_1 = arith.constant 0 : index
    %c0_2 = arith.constant 0 : index
    %1 = vector.load %arg2[%c0_1, %c0_2] : memref<128x128xf32, #tpu.memory_space<vmem>>, vector<128x128xf32>
    %cst = arith.constant dense<0.000000e+00> : vector<8x128xf32>
    %2 = tpu.matmul %0, %1, %cst {dimension_numbers = #tpu.dot_dimension_numbers<[1], [0], [0], [1], [0, 0, 1, 1], [], []>} : vector<8x128xf32>, vector<128x128xf32>, vector<8x128xf32> -> vector<8x128xf32>
    %c0_3 = arith.constant 0 : index
    %c0_4 = arith.constant 0 : index
    %3 = vector.load %arg3[%c0_3, %c0_4] : memref<3x128xf32, #tpu.memory_space<vmem>>, vector<3x128xf32>
    %4 = vector.extract_strided_slice %3 {offsets = [0, 0], sizes = [1, 128], strides = [1, 1]} : vector<3x128xf32> to vector<1x128xf32>
    %5 = vector.extract_strided_slice %3 {offsets = [1, 0], sizes = [1, 128], strides = [1, 1]} : vector<3x128xf32> to vector<1x128xf32>
    %6 = vector.extract_strided_slice %3 {offsets = [2, 0], sizes = [1, 128], strides = [1, 1]} : vector<3x128xf32> to vector<1x128xf32>
    %7 = vector.broadcast %4 : vector<1x128xf32> to vector<8x128xf32>
    %8 = arith.addf %2, %7 : vector<8x128xf32>
    %cst_5 = arith.constant dense<0.000000e+00> : vector<8xf32>
    %9 = vector.multi_reduction <add>, %8, %cst_5 [1] : vector<8x128xf32> to vector<8xf32>
    %10 = vector.shape_cast %9 : vector<8xf32> to vector<8x1xf32>
    %cst_6 = arith.constant 7.812500e-03 : f32
    %11 = vector.broadcast %cst_6 : f32 to vector<8x1xf32>
    %12 = arith.mulf %10, %11 : vector<8x1xf32>
    %13 = arith.mulf %8, %8 : vector<8x128xf32>
    %cst_7 = arith.constant dense<0.000000e+00> : vector<8xf32>
    %14 = vector.multi_reduction <add>, %13, %cst_7 [1] : vector<8x128xf32> to vector<8xf32>
    %15 = vector.shape_cast %14 : vector<8xf32> to vector<8x1xf32>
    %cst_8 = arith.constant 7.812500e-03 : f32
    %16 = vector.broadcast %cst_8 : f32 to vector<8x1xf32>
    %17 = arith.mulf %15, %16 : vector<8x1xf32>
    %18 = arith.mulf %12, %12 : vector<8x1xf32>
    %19 = arith.subf %17, %18 : vector<8x1xf32>
    %cst_9 = arith.constant 0.000000e+00 : f32
    %20 = vector.broadcast %cst_9 : f32 to vector<8x1xf32>
    %21 = arith.maximumf %19, %20 : vector<8x1xf32>
    %22 = vector.broadcast %12 : vector<8x1xf32> to vector<8x128xf32>
    %23 = arith.subf %8, %22 : vector<8x128xf32>
    %cst_10 = arith.constant 9.99999997E-7 : f32
    %24 = vector.broadcast %cst_10 : f32 to vector<8x1xf32>
    %25 = arith.addf %21, %24 : vector<8x1xf32>
    %26 = math.rsqrt %25 : vector<8x1xf32>
    %27 = vector.broadcast %26 : vector<8x1xf32> to vector<8x128xf32>
    %28 = arith.mulf %23, %27 : vector<8x128xf32>
    %29 = vector.broadcast %5 : vector<1x128xf32> to vector<8x128xf32>
    %30 = arith.mulf %28, %29 : vector<8x128xf32>
    %31 = vector.broadcast %6 : vector<1x128xf32> to vector<8x128xf32>
    %32 = arith.addf %30, %31 : vector<8x128xf32>
    %33 = arith.addf %0, %32 : vector<8x128xf32>
    %c0_11 = arith.constant 0 : index
    %c0_12 = arith.constant 0 : index
    %34 = vector.load %arg4[%c0_11, %c0_12] : memref<8x128xf32, #tpu.memory_space<vmem>>, vector<8x128xf32>
    tpu.vector_store %arg4[%c0_11, %c0_12], %33 {strides = array<i32>} : memref<8x128xf32, #tpu.memory_space<vmem>>, vector<8x128xf32>,
    return
  }
  func.func @transform_0(%arg0: i32) -> (i32, i32) {
    %c0_i32 = arith.constant 0 : i32
    %c0_i32_0 = arith.constant 0 : i32
    return %arg0, %c0_i32 : i32, i32
  }
  func.func @transform_1(%arg0: i32) -> (i32, i32) {
    %c0_i32 = arith.constant 0 : i32
    %c0_i32_0 = arith.constant 0 : i32
    %c0_i32_1 = arith.constant 0 : i32
    return %c0_i32, %c0_i32_0 : i32, i32
  }
  func.func @transform_2(%arg0: i32) -> (i32, i32) {
    %c0_i32 = arith.constant 0 : i32
    %c0_i32_0 = arith.constant 0 : i32
    %c0_i32_1 = arith.constant 0 : i32
    return %c0_i32, %c0_i32_0 : i32, i32
  }
  func.func @transform_3(%arg0: i32) -> (i32, i32) {
    %c0_i32 = arith.constant 0 : i32
    %c0_i32_0 = arith.constant 0 : i32
    return %arg0, %c0_i32 : i32, i32
  }
}

</mosaic_0001>

<bundles_post_ra>
// kernel: sublayer_connection.1
= control target key start
LH: loop header
LB: loop body
LE: loop exit
PB: predicated region body
PF: predicated region fallthrough
CT: control target
= control target key end

     0   :  { %8 = vsyncpa [#allocation3], 0  ;;  %s857_s0 = inlined_call_operand.hbm [shape: f32[16,128], index: 0, kind: input, shape index: {}]   ;;  %s858_s1 = inlined_call_operand.hbm [shape: f32[128,128], index: 1, kind: input, shape index: {}]   ;;  %s859_s2 = inlined_call_operand.vmem [shape: f32[3,128], index: 2, kind: input, shape index: {}]   ;;  %s860_s3 = inlined_call_operand.hbm [shape: f32[16,128], index: 3, kind: output, shape index: {}]  }
   0x1   :  { %10 = vsyncpa [#allocation3 + $0x1], 0 }
   0x2   :  { %11 = vsyncpa [#allocation6], 0 }
   0x3   :  { %12 = vsyncpa [#allocation4], 0 }
   0x4   :  { %14 = vsyncpa [#allocation4 + $0x1], 0  ;;  %s693_s12 = smov 0   ;;  %s695_s13 = smov 0  }
   0x5   :  { %s697_s14 = smov 0   ;;  %s699_s15 = smov 0  }
   0x6 LB: > { %s714_s16 = sadd.s32 4294967295, %s664_s15   ;;  %s413_s17 = sadd.s32 4294967294, %s664_s15   ;;  %s664_s15 = sphi %s699_s15, %s882_s15   ;;  %s660_s14 = sphi %s697_s14, %s881_s14   ;;  %s656_s13 = sphi %s695_s13, %s880_s13   ;;  %s652_s12 = sphi %s693_s12, %s879_s12  }
   0x7   : > { %p40_p0 = scmp.ne.s32.totalorder %s656_s13, %s652_s12  ;;  %p861_p1 = scmp.eq.s32.totalorder %s714_s16, 0 }
   0x8   : > { %p112_p3 = scmp.eq.s32.totalorder %s413_s17, 1  ;;  %p414_p5 = scmp.ge.s32.totalorder %s664_s15, 1 }
   0x9   : > { %p723_p4 = por %p861_p1, %p40_p0  ;;  %p119_p7 = scmp.lt.s32.totalorder %s664_s15, 3 }
   0xa   : > { %p728_p6 = por %p112_p3, %p40_p0  ;;  %s666_s21 = smov [#allocation5]  }
   0xb   : > { %s865_s18 = scalar_select %p723_p4, 1, 0 }
   0xc   : > { %s866_s19 = scalar_select %p728_p6, 1, 0 }
   0xd   : > { %p733_p8 = pnand %p414_p5, %p119_p7  ;;  %s131_s22 = sshll.u32 %s666_s21, 4  ;;  %s132_s22 = int_to_ptr.vmem [resolvable:$true] %s131_s22 }
   0xe   : > { %s747_s24 = sadd.s32 1, %s664_s15   ;;  %s27_s25 = sadd.s32 1, %s660_s14 }
   0xf   : > { %s867_s20 = scalar_select %p733_p8, 1, 0 }
  0x10   : > { %p487_p9 = pneg %p733_p8  ;;  %s24_s26 = ssub.s32 %s664_s15, %s747_s24 }
  0x11   : > { %s553_s27 = scalar_lea.vmem %s132_s22, 2048  ;;  %p561_p5 = scmp.lt.s32.totalorder %s132_s22, %s132_s22 }
  0x12   : > { %p742_p11 = pnand %p487_p9, %p861_p1  ;;  %p554_p13 = scmp.ne.s32.totalorder %s132_s22, %s553_s27 }
  0x13   : > { %p562_p7 = scmp.lt.s32.totalorder %s553_s27, %s553_s27 }
  0x14   : > { %p544_p12 = pneg %p742_p11 }
  0x15   : > { %p563_p10 = por %p562_p7, %p561_p5 }
  0x16   : > { %p556_p0 = pnand %p554_p13, %p544_p12 }
  0x18   : > { %p557_p3 = pneg %p556_p0 }
  0x1a   : > { %p564_p2 = pnand %p563_p10, %p557_p3 }
  0x1c   : > { %567 = shalt.err (!%p564_p2)
}
  0x1d   : > { %s667_s28 = smov 128   ;;  %s668_s29 = smov 8  }
  0x1e   : > { %490 = dma.hbm_to_vmem [thread:$0]  (!%p742_p11), %s858_s1, 2048, %s132_s22, [#allocation6], %s667_s28, %s667_s28, %s668_s29  }
  0x1f   : > { %p25_p9 = scmp.eq.s32.totalorder %s24_s26, 0  ;;  %p34_p12 = scmp.ne.s32.totalorder %s660_s14, %s656_s13 }
  0x20   : > { %p35_p10 = scmp.eq.s32.totalorder %s664_s15, 0  ;;  %p500_p2 = scmp.lt.s32.totalorder %s664_s15, 2 }
  0x21   : > { %s764_s5 = scalar_select %p25_p9, %s660_s14, %s27_s25  }
  0x22   : > { %p36_p13 = por %p35_p10, %p34_p12  ;;  %p869_p0 = scmp.eq.s32.totalorder %s714_s16, 1 }
  0x23   : > { %s148_s7 = sand.u32 1, %s660_s14   ;;  %s418_s8 = sshll.u32 %s664_s15, 7 }
  0x24   : > { %p768_p3 = por %p869_p0, %p34_p12  ;;  %s417_s9 = sshll.u32 %s148_s7, 3 }
  0x25   : > { %s777_s17 = scalar_lea.hbm %s857_s0, %s418_s8  ;;  %s152_s21 = scalar_lea.vmem [#allocation2], %s417_s9 }
  0x26   : > { %s870_s6 = scalar_select %p768_p3, 1, 0 }
  0x27   : > { %s159_s22 = sshll.u32 %s152_s21, 4  ;;  %p779_p11 = pnand %p500_p2, %p36_p13  ;;  %s160_s22 = int_to_ptr.vmem [resolvable:$true] %s159_s22 }
  0x28   : > { %s149_s25 = scalar_lea.sflag [#allocation3], %s148_s7  ;;  %s568_s26 = scalar_lea.hbm %s777_s17, 128 }
  0x29   : > { %p569_p5 = scmp.ne.s32.totalorder %s777_s17, %s568_s26  ;;  %p570_p7 = pneg %p779_p11 }
  0x2a   : > { %s573_s29 = scalar_lea.hbm %s857_s0, 256  ;;  %p574_p10 = scmp.lt.s32.totalorder %s777_s17, %s857_s0 }
  0x2b   : > { %p571_p9 = pnand %p570_p7, %p569_p5  ;;  %p575_p2 = scmp.lt.s32.totalorder %s573_s29, %s568_s26 }
  0x2d   : > { %p572_p12 = pneg %p571_p9  ;;  %p576_p13 = por %p575_p2, %p574_p10 }
  0x2f   : > { %p577_p0 = pnand %p576_p13, %p572_p12 }
  0x31   : > { %580 = shalt.err (!%p577_p0)
}
  0x32   : > { %s581_s8 = scalar_lea.vmem %s160_s22, 128  ;;  %s669_s7 = smov [#allocation2]  }
  0x33   : > { %p582_p1 = scmp.ne.s32.totalorder %s160_s22, %s581_s8  ;;  %s586_s9 = sshll.u32 %s669_s7, 4  ;;  %s587_s9 = int_to_ptr.vmem [resolvable:$false] %s586_s9 }
  0x34   : > { %s588_s10 = scalar_lea.vmem %s587_s9, 256  ;;  %p589_p5 = scmp.lt.s32.totalorder %s160_s22, %s587_s9 }
  0x35   : > { %p584_p6 = pnand %p582_p1, %p570_p7  ;;  %p590_p9 = scmp.lt.s32.totalorder %s588_s10, %s581_s8 }
  0x37   : > { %p585_p3 = pneg %p584_p6  ;;  %p591_p4 = por %p590_p9, %p589_p5 }
  0x39   : > { %p592_p8 = pnand %p591_p4, %p585_p3 }
  0x3b   : > { %595 = shalt.err (!%p592_p8)
}
  0x3c   : > { %494 = dma.hbm_to_vmem [thread:$0]  (!%p779_p11), %s777_s17, 128, %s160_s22, %s149_s25  }
  0x3d   : > { %p872_p12 = scmp.ne.s32.totalorder %s867_s20, 0 }
  0x3e   : > { %s800_s11 = sand.u32 (!%p872_p12), 1, %s656_s13   ;;  %p873_p1 = scmp.ne.s32.totalorder (!%p872_p12), %s865_s18, 0 }
  0x3f   : > { %168 = sbr.rel (%p872_p12) target bundleno = 485 (0x1e5), region = 32  ;;  %s420_s21 = sshll.u32 (!%p872_p12), %s800_s11, 3 }
  0x40   : > { %s171_s26 = scalar_lea.sflag (!%p872_p12), [#allocation3], %s800_s11  ;;  %s806_s27 = scalar_lea.vmem (!%p872_p12), [#allocation2], %s420_s21 }
  0x44   : > { %639 = dma.done.wait (%p873_p1), %s171_s26, 128  }
  0x45   : > { %641 = vsyncadd (%p873_p1), %s171_s26, 4294967168  ;;  %p874_p4 = scmp.eq.s32.totalorder %s714_s16, 0 }
  0x47   : > { %643 = dma.done.wait (%p874_p4), [#allocation6], 2048   ;;  %p875_p6 = pmov %p874_p4 }
  0x48   : > { %v670_v0 = vmov 0.0   ;;  %vm671_vm0 = vmmov 0   ;;  %v217_v1 = vld [vmem:[#allocation5 + $0x78] sm:$0xff]  ;;  %v216_v2 = vld [vmem:[#allocation5 + $0x70] sm:$0xff]  ;;  %v215_v3 = vld [vmem:[#allocation5 + $0x68] sm:$0xff]  ;;  %v219_v18 = vlaneseq  ;;  %s424_s17 = sshll.u32 %s714_s16, 7 }
  0x49   : > { %645 = vsyncadd (%p875_p6), [#allocation6], 4294965248  ;;  %444 = vmatprep.subr.mxu0 %v670_v0  ;;  %476 = vmatprep.mubr.msk.f32.mxu0 %vm671_vm0, %v670_v0  ;;  %v214_v4 = vld [vmem:[#allocation5 + $0x60] sm:$0xff]  ;;  %v213_v5 = vld [vmem:[#allocation5 + $0x58] sm:$0xff]  ;;  %s200_s22 = scalar_lea.vmem [#allocation7], %s420_s21  ;;  %s331_s29 = scalar_lea.hbm %s860_s3, %s424_s17 }
  0x4a   : > { %445 = vmatpush3.msra.mxu0 %v217_v1  ;;  %v212_v6 = vld [vmem:[#allocation5 + $0x50] sm:$0xff]  ;;  %v211_v7 = vld [vmem:[#allocation5 + $0x48] sm:$0xff]  ;;  %v210_v8 = vld [vmem:[#allocation5 + $0x40] sm:$0xff]  ;;  %v220_v19 = vshrl.u32 %v219_v18, 7  ;;  %s333_s23 = sshll.u32 %s200_s22, 4  ;;  %s320_s30 = scalar_lea.sflag [#allocation4], %s800_s11  ;;  %s334_s23 = int_to_ptr.vmem [resolvable:$true] %s333_s23 }
  0x4b   : > { %446 = vmatprep.subr.mxu0 %v670_v0  ;;  %v209_v9 = vld [vmem:[#allocation5 + $0x38] sm:$0xff]  ;;  %v208_v10 = vld [vmem:[#allocation5 + $0x30] sm:$0xff]  ;;  %v207_v11 = vld [vmem:[#allocation5 + $0x28] sm:$0xff]  ;;  %s596_s4 = scalar_lea.vmem %s334_s23, 128  ;;  %p876_p3 = scmp.ne.s32.totalorder %s870_s6, 0 }
  0x4c   : > { %447 = vmatpush3.msra.mxu0 %v216_v2  ;;  %v206_v12 = vld [vmem:[#allocation5 + $0x20] sm:$0xff]  ;;  %v205_v13 = vld [vmem:[#allocation5 + $0x18] sm:$0xff]  ;;  %v204_v14 = vld [vmem:[#allocation5 + $0x10] sm:$0xff]  ;;  %v221_v20 = vsub.s32 0, %v220_v19  ;;  %v309_v35 = vsub.s32 1, %v220_v19  ;;  %v314_v36 = vsub.s32 2, %v220_v19  ;;  %p597_p8 = scmp.ne.s32.totalorder %s334_s23, %s596_s4 }
  0x4d   : > { %448 = vmatprep.subr.mxu0 %v670_v0  ;;  %v203_v15 = vld [vmem:[#allocation5 + $0x8] sm:$0xff]  ;;  %v202_v16 = vld [vmem:[#allocation5] sm:$0xff]  ;;  %v201_v17 = vld [vmem:[%s806_s27] sm:$0xff]  ;;  %s672_s8 = smov [#allocation7]  }
  0x4e   : > { %449 = vmatpush3.msra.mxu0 %v215_v3  ;;  %v218_v21 = vld [vmem:[%s859_s2] sm:$0x7]  ;;  %p598_p11 = pnand %p597_p8, %p876_p3  ;;  %s600_s7 = sshll.u32 %s672_s8, 4  ;;  %s601_s7 = int_to_ptr.vmem [resolvable:$false] %s600_s7 }
  0x4f   : > { %450 = vmatprep.subr.mxu0 %v670_v0  ;;  %v222_v22 = vrot.slane %v218_v21, %v221_v20  ;;  %v310_v37 = vrot.slane %v218_v21, %v309_v35  ;;  %v315_v40 = vrot.slane %v218_v21, %v314_v36  ;;  %s602_s16 = scalar_lea.vmem %s601_s7, 256  ;;  %p603_p10 = scmp.lt.s32.totalorder %s334_s23, %s601_s7 }
  0x50   : > { %451 = vmatpush3.msra.mxu0 %v214_v4  ;;  %p599_p7 = pneg %p598_p11  ;;  %p604_p2 = scmp.lt.s32.totalorder %s602_s16, %s596_s4 }
  0x51   : > { %452 = vmatprep.subr.mxu0 %v670_v0 }
  0x52   : > { %453 = vmatpush3.msra.mxu0 %v213_v5  ;;  %p605_p13 = por %p604_p2, %p603_p10 }
  0x53   : > { %454 = vmatprep.subr.mxu0 %v670_v0 }
  0x54   : > { %455 = vmatpush3.msra.mxu0 %v212_v6  ;;  %p606_p0 = pnand %p605_p13, %p599_p7 }
  0x55   : > { %456 = vmatprep.subr.mxu0 %v670_v0 }
  0x56   : > { %457 = vmatpush3.msra.mxu0 %v211_v7 }
  0x57   : > { %458 = vmatprep.subr.mxu0 %v670_v0 }
  0x58   : > { %459 = vmatpush3.msra.mxu0 %v210_v8 }
  0x59   : > { %460 = vmatprep.subr.mxu0 %v670_v0 }
  0x5a   : > { %461 = vmatpush3.msra.mxu0 %v209_v9 }
  0x5b   : > { %462 = vmatprep.subr.mxu0 %v670_v0 }
  0x5c   : > { %463 = vmatpush3.msra.mxu0 %v208_v10 }
  0x5d   : > { %464 = vmatprep.subr.mxu0 %v670_v0 }
  0x5e   : > { %465 = vmatpush3.msra.mxu0 %v207_v11 }
  0x5f   : > { %466 = vmatprep.subr.mxu0 %v670_v0 }
  0x60   : > { %467 = vmatpush3.msra.mxu0 %v206_v12 }
  0x61   : > { %468 = vmatprep.subr.mxu0 %v670_v0 }
  0x62   : > { %469 = vmatpush3.msra.mxu0 %v205_v13 }
  0x63   : > { %470 = vmatprep.subr.mxu0 %v670_v0 }
  0x64   : > { %471 = vmatpush3.msra.mxu0 %v204_v14 }
  0x65   : > { %472 = vmatprep.subr.mxu0 %v670_v0 }
  0x66   : > { %473 = vmatpush3.msra.mxu0 %v203_v15 }
  0x67   : > { %474 = vmatprep.subr.mxu0 %v670_v0 }
  0x68   : > { %475 = vmatpush3.msra.mxu0 %v202_v16 }
  0x69   : > { %477 = vmatmul.mubr.f32.vlgmr.msra.gmra.mxu0 %v201_v17 }
 0x129   : > { %v289_v23 = vpop.f32.mrf.mxu0 }
 0x12a   : > { %v290_v24 = vadd.f32 %v289_v23, %v222_v22 }
 0x12b   : > { %v478_v25 = vpop.f32.mrf.mxu0 }
 0x12c   : > { %293 = vadd.xlane.f32.xlu0 %v290_v24  ;;  %v296_v26 = vmul.f32 %v290_v24, %v290_v24 }
 0x130   : > { %297 = vadd.xlane.f32.xlu0 %v296_v26 }
 0x1b5   : > { %v294_v27 = vpop.xlane.xlu0 %293 }
 0x1b6   : > { %v295_v28 = vmul.f32 0.0078125, %v294_v27 }
 0x1b8   : > { %v300_v30 = vmul.f32 %v295_v28, %v295_v28  ;;  %v303_v38 = vsub.f32 %v290_v24, %v295_v28 }
 0x1b9   : > { %v298_v29 = vpop.xlane.xlu0 %297 }
 0x1ba   : > { %v299_v31 = vmul.f32 0.0078125, %v298_v29 }
 0x1bc   : > { %v301_v32 = vsub.f32 %v299_v31, %v300_v30 }
 0x1be   : > { %v302_v33 = vmax.f32 %v301_v32, 0.0 }
 0x1c0   : > { %v304_v34 = vadd.f32 1e-06, %v302_v33 }
 0x1c2   : > { %540 = vrsqrt.f32 %v304_v34 }
 0x1cf   : > { %v541_v39 = vpop.eup %540 }
 0x1d0   : > { %v306_v41 = vmul.f32 %v541_v39, %v303_v38 }
 0x1d2   : > { %v311_v42 = vmul.f32 %v310_v37, %v306_v41 }
 0x1d4   : > { %v316_v43 = vadd.f32 %v315_v40, %v311_v42 }
 0x1d6   : > { %v317_v44 = vadd.f32 %v316_v43, %v201_v17 }
 0x1d8   : > { %318 = vst [vmem:[%s200_s22] sm:$0xff] %v317_v44 }
 0x1d9   : > { %609 = shalt.err (!%p606_p0)
}
 0x1da   : > { %s610_s9 = scalar_lea.hbm %s331_s29, 128  ;;  %s614_s21 = scalar_lea.hbm %s860_s3, 256 }
 0x1db   : > { %p611_p5 = scmp.ne.s32.totalorder %s331_s29, %s610_s9  ;;  %p615_p1 = scmp.lt.s32.totalorder %s331_s29, %s860_s3 }
 0x1dc   : > { %p616_p4 = scmp.lt.s32.totalorder %s614_s21, %s610_s9 }
 0x1dd   : > { %p612_p9 = pnand %p611_p5, %p876_p3 }
 0x1de   : > { %p617_p6 = por %p616_p4, %p615_p1 }
 0x1df   : > { %p613_p12 = pneg %p612_p9 }
 0x1e1   : > { %p618_p8 = pnand %p617_p6, %p613_p12 }
 0x1e3   : > { %621 = shalt.err (!%p618_p8)
}
 0x1e4   : > { %485 = dma.vmem_to_hbm [thread:$0]  (%p876_p3), %s334_s23, 128, %s331_s29, %s320_s30  }
 0x1e5 PF: > { %s345_s18 = sand.u32 1, %s652_s12   ;;  %p877_p11 = scmp.ne.s32.totalorder %s866_s19, 0 }
 0x1e6   : > { %p878_p7 = scmp.ge.s32.totalorder %s664_s15, 2  ;;  %s346_s20 = scalar_lea.sflag [#allocation4], %s345_s18 }
 0x1e8   : > { %p496_p10 = pnand %p878_p7, %p877_p11 }
 0x1ea   : > { %p497_p2 = pneg %p496_p10 }
 0x1ec   : > { %647 = dma.done.wait (%p497_p2), %s346_s20, 128  }
 0x1ed   : > { %649 = vsyncadd (%p497_p2), %s346_s20, 4294967168  ;;  %p17_p13 = scmp.ge.s32.totalorder %s747_s24, 4   ;;  %s879_s12 = smov %s656_s13 }
 0x1ee   : > { %s880_s13 = smov %s660_s14  ;;  %s881_s14 = smov %s764_s5 }
 0x1ef   : > { %s882_s15 = smov %s747_s24  ;;  %19 = sbr.rel (!%p17_p13) target bundleno = 6 (0x6), region = 81 }
 0x1f4   :  { %351 = vsyncpa [#allocation3], 1 }
 0x1f5   :  { %353 = vsyncpa [#allocation3 + $0x1], 1 }
 0x1f6   :  { %354 = vsyncpa [#allocation6], 1 }
 0x1f7   :  { %355 = vsyncpa [#allocation4], 1 }
 0x1f8   :  { %357 = vsyncpa [#allocation4 + $0x1], 1 }

</bundles_post_ra>
